<compile_context>
chip_gen: v5e
topology: v5e:2x2
jax: 0.10.0
libtpu: 0.0.40
codegen_flags: <defaults>
</compile_context>

<pallas_src>
import functools

import jax
import jax.numpy as jnp
from jax.experimental import pallas as pl
from jax.experimental.pallas import tpu as pltpu

_LANE = 128
_SUBLANE = 8


def _round_up(v, m):
    return (v + m - 1) // m * m


# ----------------------------------------------------------------------------
# Per-grid-step kernel: one GraphGRUCell layer.  grid = (num_layers,).
# Refs (F = padded feature width, Np = padded node count):
#   a_ref    : (Np, Np)     row-normalized adjacency          (resident, idx (0,0))
#   x0_ref   : (Np, F)      input features, layer-0 x         (resident, idx (0,0))
#   h_ref    : (Np, F)      this layer's initial hidden state (per-layer block)
#   wx_ref   : (F, 3F)      x-projection weights, columns [r | u | c]
#   whru_ref : (F, 2F)      h-projection weights, columns [r | u]
#   whc_ref  : (F, F)       h_-projection weight for the c gate
#   bru_ref  : (1, 2F)      gate biases [r | u]
#   bc_ref   : (1, F)       gate bias c
#   out_ref  : (Np, F)      this layer's new hidden state
#   x_scr    : (Np, F)      VMEM scratch carrying x between layers
# ----------------------------------------------------------------------------
def _layer_kernel(a_ref, x0_ref, h_ref, wx_ref, whru_ref, whc_ref,
                  bru_ref, bc_ref, out_ref, x_scr, *, compute_dtype):
    F = whc_ref.shape[-1]

    @pl.when(pl.program_id(0) == 0)
    def _():
        x_scr[...] = x0_ref[...]

    a = a_ref[...].astype(compute_dtype)          # cast once for MXU operands
    x = x_scr[...]                                # f32 activations
    h = h_ref[...]

    # One matmul produces x-projections for all three gates (128-aligned cols).
    gx = jnp.dot(x.astype(compute_dtype), wx_ref[...],
                 preferred_element_type=jnp.float32)                 # (Np, 3F)
    # One matmul for the h-projections of r and u.
    gh_ru = jnp.dot(h.astype(compute_dtype), whru_ref[...],
                    preferred_element_type=jnp.float32)              # (Np, 2F)

    # r and u share a single graph matmul: A @ ([x,h] W_{r|u}).
    pre_ru = gx[:, :2 * F] + gh_ru
    ru = jax.nn.sigmoid(
        jnp.dot(a, pre_ru.astype(compute_dtype),
                preferred_element_type=jnp.float32) + bru_ref[...])
    r = ru[:, :F]
    u = ru[:, F:]

    h_ = r * h
    pre_c = gx[:, 2 * F:] + jnp.dot(h_.astype(compute_dtype), whc_ref[...],
                                    preferred_element_type=jnp.float32)
    c = jax.nn.sigmoid(
        jnp.dot(a, pre_c.astype(compute_dtype),
                preferred_element_type=jnp.float32) + bc_ref[...])

    new_h = u * h + (1.0 - u) * c
    out_ref[...] = new_h
    x_scr[...] = new_h                            # feed next layer


# ----------------------------------------------------------------------------
# Wrapper: pad to TPU-friendly shapes, pack per-gate weights, run the kernel.
# ----------------------------------------------------------------------------
def _build_packed_params(layer_params, in_feats, out_feats, F, compute_dtype):
    wx_blocks, whru_blocks, whc_blocks, bru_blocks, bc_blocks = [], [], [], [], []
    for l, p in enumerate(layer_params):
        in_l = in_feats if l == 0 else out_feats

        def split_pad(w):
            # net weight W has shape (in_l + out_feats, out_feats) acting on [x, h].
            wx = jnp.pad(w[:in_l], ((0, F - in_l), (0, F - out_feats)))
            wh = jnp.pad(w[in_l:], ((0, F - out_feats), (0, F - out_feats)))
            return wx, wh

        wx_r, wh_r = split_pad(p["w_r"])
        wx_u, wh_u = split_pad(p["w_u"])
        wx_c, wh_c = split_pad(p["w_c"])

        def pad_bias(b):
            return jnp.pad(b, (0, F - out_feats)).reshape(1, F)

        wx_blocks.append(jnp.concatenate([wx_r, wx_u, wx_c], axis=1))   # (F, 3F)
        whru_blocks.append(jnp.concatenate([wh_r, wh_u], axis=1))       # (F, 2F)
        whc_blocks.append(wh_c)                                         # (F, F)
        bru_blocks.append(jnp.concatenate([pad_bias(p["b_r"]),
                                           pad_bias(p["b_u"])], axis=1))
        bc_blocks.append(pad_bias(p["b_c"]))

    wx_all = jnp.stack(wx_blocks).astype(compute_dtype)
    wh_ru = jnp.stack(whru_blocks).astype(compute_dtype)
    wh_c = jnp.stack(whc_blocks).astype(compute_dtype)
    b_ru = jnp.stack(bru_blocks).astype(jnp.float32)
    b_c = jnp.stack(bc_blocks).astype(jnp.float32)
    return wx_all, wh_ru, wh_c, b_ru, b_c


def stacked_encoder_forward(layer_params, a_norm, x, hidden_states, *,
                            compute_dtype=jnp.float32):
    """StackedEncoder.forward(g, x, hidden_states) with g given as dense a_norm.

    a_norm: (N, N) row-normalized adjacency;  x: (N, in_feats)
    hidden_states: (L, N, out_feats)
    Returns (x_out (N, out_feats), hiddens (L, N, out_feats)).
    """
    num_layers = len(layer_params)
    N, in_feats = x.shape
    out_feats = hidden_states.shape[-1]

    Np = _round_up(N, _SUBLANE)
    F = _round_up(max(in_feats, out_feats), _LANE)

    a_p = jnp.pad(a_norm.astype(jnp.float32), ((0, Np - N), (0, Np - N)))
    x_p = jnp.pad(x.astype(jnp.float32), ((0, Np - N), (0, F - in_feats)))
    h_p = jnp.pad(hidden_states.astype(jnp.float32),
                  ((0, 0), (0, Np - N), (0, F - out_feats)))

    wx_all, wh_ru, wh_c, b_ru, b_c = _build_packed_params(
        layer_params, in_feats, out_feats, F, compute_dtype)

    kernel = functools.partial(_layer_kernel, compute_dtype=compute_dtype)

    out = pl.pallas_call(
        kernel,
        out_shape=jax.ShapeDtypeStruct((num_layers, Np, F), jnp.float32),
        grid_spec=pltpu.PrefetchScalarGridSpec(
            num_scalar_prefetch=0,
            grid=(num_layers,),
            in_specs=[
                pl.BlockSpec((Np, Np), lambda l: (0, 0)),            # A (resident)
                pl.BlockSpec((Np, F), lambda l: (0, 0)),             # x0 (resident)
                pl.BlockSpec((None, Np, F), lambda l: (l, 0, 0)),    # h[l]
                pl.BlockSpec((None, F, 3 * F), lambda l: (l, 0, 0)), # Wx[r|u|c]
                pl.BlockSpec((None, F, 2 * F), lambda l: (l, 0, 0)), # Wh[r|u]
                pl.BlockSpec((None, F, F), lambda l: (l, 0, 0)),     # Wh[c]
                pl.BlockSpec((None, 1, 2 * F), lambda l: (l, 0, 0)), # b[r|u]
                pl.BlockSpec((None, 1, F), lambda l: (l, 0, 0)),     # b[c]
            ],
            out_specs=pl.BlockSpec((None, Np, F), lambda l: (l, 0, 0)),
            scratch_shapes=[pltpu.VMEM((Np, F), jnp.float32)],       # x carry
        ),
        compiler_params=pltpu.CompilerParams(
            dimension_semantics=("arbitrary",),   # layers are sequentially dependent
            vmem_limit_bytes=32 * 1024 * 1024,
        ),
    )(a_p, x_p, h_p, wx_all, wh_ru, wh_c, b_ru, b_c)

    hiddens = out[:, :N, :out_feats]
    return hiddens[-1], hiddens


# ----------------------------------------------------------------------------
# Parameter init (matches GraphGRUCell: linear nets on [x, h], torch.rand biases)
# ----------------------------------------------------------------------------
def init_params(key, in_feats, out_feats, num_layers):
    layers = []
    for l in range(num_layers):
        in_l = in_feats if l == 0 else out_feats
        scale = (in_l + out_feats) ** -0.5
        key, kwr, kwu, kwc, kbr, kbu, kbc = jax.random.split(key, 7)

        def u(k, shape, lo, hi):
            return jax.random.uniform(k, shape, jnp.float32, lo, hi)

        layers.append({
            "w_r": u(kwr, (in_l + out_feats, out_feats), -scale, scale),
            "w_u": u(kwu, (in_l + out_feats, out_feats), -scale, scale),
            "w_c": u(kwc, (in_l + out_feats, out_feats), -scale, scale),
            "b_r": u(kbr, (out_feats,), 0.0, 1.0),     # torch.rand -> U[0,1)
            "b_u": u(kbu, (out_feats,), 0.0, 1.0),
            "b_c": u(kbc, (out_feats,), 0.0, 1.0),
        })
    return layers


def ring_graph_adj(n):
    """Row-normalized adjacency of a ring graph with self-loops (dense)."""
    idx = jnp.arange(n)
    adj = jnp.zeros((n, n), jnp.float32)
    adj = adj.at[idx, (idx + 1) % n].set(1.0)
    adj = adj.at[idx, (idx - 1) % n].set(1.0)
    adj = adj + jnp.eye(n, dtype=jnp.float32)
    return adj / adj.sum(axis=1, keepdims=True)


# ----------------------------------------------------------------------------
# Pure-JAX reference mirroring the PyTorch forward exactly
# ----------------------------------------------------------------------------
def _ref_forward(layer_params, a, x, h_stack):
    hp = jax.lax.Precision.HIGHEST

    def mm(p, q):
        return jnp.dot(p, q, precision=hp)

    hiddens = []
    for l, p in enumerate(layer_params):
        h = h_stack[l]
        z = jnp.concatenate([x, h], axis=1)
        r = jax.nn.sigmoid(mm(a, mm(z, p["w_r"])) + p["b_r"])
        u = jax.nn.sigmoid(mm(a, mm(z, p["w_u"])) + p["b_u"])
        h_ = r * h
        z2 = jnp.concatenate([x, h_], axis=1)
        c = jax.nn.sigmoid(mm(a, mm(z2, p["w_c"])) + p["b_c"])
        x = u * h + (1.0 - u) * c
        hiddens.append(x)
    return x, jnp.stack(hiddens)


if __name__ == "__main__":
    key = jax.random.PRNGKey(0)

    num_nodes = 16
    in_feats = 8
    out_feats = 32
    num_layers = 2

    kp, kx, kh = jax.random.split(key, 3)
    params = init_params(kp, in_feats, out_feats, num_layers)
    a_norm = ring_graph_adj(num_nodes)
    x = jax.random.normal(kx, (num_nodes, in_feats), jnp.float32)
    h_stack = jax.random.normal(kh, (num_layers, num_nodes, out_feats), jnp.float32)

    # f32 path (tight check)
    x_out, hiddens = stacked_encoder_forward(params, a_norm, x, h_stack)
    x_out = jax.block_until_ready(x_out)

    x_ref, hiddens_ref = _ref_forward(params, a_norm, x, h_stack)
    assert x_out.shape == (num_nodes, out_feats)
    assert hiddens.shape == (num_layers, num_nodes, out_feats)
    assert float(jnp.max(jnp.abs(x_out - x_ref))) < 1e-3, "mismatch vs reference (f32)"
    assert float(jnp.max(jnp.abs(hiddens - hiddens_ref))) < 1e-3, "hiddens mismatch (f32)"

    # bf16 matmul-operand path (v6e/v7x); gate math stays f32.
    x_bf16, _ = stacked_encoder_forward(params, a_norm, x, h_stack,
                                        compute_dtype=jnp.bfloat16)
    x_bf16 = jax.block_until_ready(x_bf16)
    assert float(jnp.max(jnp.abs(x_bf16 - x_ref))) < 5e-2, "mismatch vs reference (bf16)"

    print("KERNEL_OK")
</pallas_src>

<mosaic_0001>
module attributes {stable_mosaic.version = 11 : i64} {
  func.func @_layer_kernel(%arg0: i32, %arg1: memref<16x16xf32, #tpu.memory_space<vmem>>, %arg2: memref<16x128xf32, #tpu.memory_space<vmem>>, %arg3: memref<1x16x128xf32, #tpu.memory_space<vmem>>, %arg4: memref<1x128x384xf32, #tpu.memory_space<vmem>>, %arg5: memref<1x128x256xf32, #tpu.memory_space<vmem>>, %arg6: memref<1x128x128xf32, #tpu.memory_space<vmem>>, %arg7: memref<1x1x256xf32, #tpu.memory_space<vmem>>, %arg8: memref<1x1x128xf32, #tpu.memory_space<vmem>>, %arg9: memref<1x16x128xf32, #tpu.memory_space<vmem>>, %arg10: memref<16x128xf32, #tpu.memory_space<vmem>>) attributes {dimension_semantics = [#tpu.dimension_semantics<arbitrary>], iteration_bounds = array<i64: 2>, scalar_prefetch = 0 : i64, scratch_operands = 1 : i64, tpu.core_type = #tpu.core_type<tc>, window_params = [{pipeline_mode = #tpu.pipeline_mode<synchronous>, transform_indices = @transform_0, window_bounds = array<i64: 16, 16>}, {pipeline_mode = #tpu.pipeline_mode<synchronous>, transform_indices = @transform_1, window_bounds = array<i64: 16, 128>}, {transform_indices = @transform_2, window_bounds = array<i64: 1, 16, 128>}, {transform_indices = @transform_3, window_bounds = array<i64: 1, 128, 384>}, {transform_indices = @transform_4, window_bounds = array<i64: 1, 128, 256>}, {transform_indices = @transform_5, window_bounds = array<i64: 1, 128, 128>}, {transform_indices = @transform_6, window_bounds = array<i64: 1, 1, 256>}, {transform_indices = @transform_7, window_bounds = array<i64: 1, 1, 128>}, {transform_indices = @transform_8, window_bounds = array<i64: 1, 16, 128>}]} {
    %c0_i32 = arith.constant 0 : i32
    %0 = arith.cmpi eq, %arg0, %c0_i32 : i32
    %1 = arith.extui %0 : i1 to i32
    %c0_i32_0 = arith.constant 0 : i32
    %2 = arith.cmpi ne, %1, %c0_i32_0 : i32
    scf.if %2 {
      %c0_34 = arith.constant 0 : index
      %c0_35 = arith.constant 0 : index
      %52 = vector.load %arg2[%c0_34, %c0_35] : memref<16x128xf32, #tpu.memory_space<vmem>>, vector<16x128xf32>
      %c0_36 = arith.constant 0 : index
      %c0_37 = arith.constant 0 : index
      %53 = vector.load %arg10[%c0_36, %c0_37] : memref<16x128xf32, #tpu.memory_space<vmem>>, vector<16x128xf32>
      tpu.vector_store %arg10[%c0_36, %c0_37], %52 {strides = array<i32>} : memref<16x128xf32, #tpu.memory_space<vmem>>, vector<16x128xf32>,
    } else {
    }
    %c0 = arith.constant 0 : index
    %c0_1 = arith.constant 0 : index
    %3 = vector.load %arg1[%c0, %c0_1] : memref<16x16xf32, #tpu.memory_space<vmem>>, vector<16x16xf32>
    %c0_2 = arith.constant 0 : index
    %c0_3 = arith.constant 0 : index
    %4 = vector.load %arg10[%c0_2, %c0_3] : memref<16x128xf32, #tpu.memory_space<vmem>>, vector<16x128xf32>
    %c0_4 = arith.constant 0 : index
    %c0_5 = arith.constant 0 : index
    %c0_6 = arith.constant 0 : index
    %5 = vector.load %arg3[%c0_4, %c0_5, %c0_6] : memref<1x16x128xf32, #tpu.memory_space<vmem>>, vector<1x16x128xf32>
    %6 = vector.shape_cast %5 : vector<1x16x128xf32> to vector<16x128xf32>
    %c0_7 = arith.constant 0 : index
    %c0_8 = arith.constant 0 : index
    %c0_9 = arith.constant 0 : index
    %7 = vector.load %arg4[%c0_7, %c0_8, %c0_9] : memref<1x128x384xf32, #tpu.memory_space<vmem>>, vector<1x128x384xf32>
    %8 = vector.shape_cast %7 : vector<1x128x384xf32> to vector<128x384xf32>
    %cst = arith.constant dense<0.000000e+00> : vector<16x384xf32>
    %9 = tpu.matmul %4, %8, %cst {dimension_numbers = #tpu.dot_dimension_numbers<[1], [0], [0], [1], [0, 0, 1, 1], [], []>} : vector<16x128xf32>, vector<128x384xf32>, vector<16x384xf32> -> vector<16x384xf32>
    %c0_10 = arith.constant 0 : index
    %c0_11 = arith.constant 0 : index
    %c0_12 = arith.constant 0 : index
    %10 = vector.load %arg5[%c0_10, %c0_11, %c0_12] : memref<1x128x256xf32, #tpu.memory_space<vmem>>, vector<1x128x256xf32>
    %11 = vector.shape_cast %10 : vector<1x128x256xf32> to vector<128x256xf32>
    %cst_13 = arith.constant dense<0.000000e+00> : vector<16x256xf32>
    %12 = tpu.matmul %6, %11, %cst_13 {dimension_numbers = #tpu.dot_dimension_numbers<[1], [0], [0], [1], [0, 0, 1, 1], [], []>} : vector<16x128xf32>, vector<128x256xf32>, vector<16x256xf32> -> vector<16x256xf32>
    %13 = vector.extract_strided_slice %9 {offsets = [0, 0], sizes = [16, 256], strides = [1, 1]} : vector<16x384xf32> to vector<16x256xf32>
    %14 = arith.addf %13, %12 : vector<16x256xf32>
    %cst_14 = arith.constant dense<0.000000e+00> : vector<16x256xf32>
    %15 = tpu.matmul %3, %14, %cst_14 {dimension_numbers = #tpu.dot_dimension_numbers<[1], [0], [0], [1], [0, 0, 1, 1], [], []>} : vector<16x16xf32>, vector<16x256xf32>, vector<16x256xf32> -> vector<16x256xf32>
    %c0_15 = arith.constant 0 : index
    %c0_16 = arith.constant 0 : index
    %c0_17 = arith.constant 0 : index
    %16 = vector.load %arg7[%c0_15, %c0_16, %c0_17] : memref<1x1x256xf32, #tpu.memory_space<vmem>>, vector<1x1x256xf32>
    %17 = vector.shape_cast %16 : vector<1x1x256xf32> to vector<1x256xf32>
    %18 = vector.broadcast %17 : vector<1x256xf32> to vector<16x256xf32>
    %19 = arith.addf %15, %18 : vector<16x256xf32>
    %20 = arith.negf %19 : vector<16x256xf32>
    %21 = math.exp %20 : vector<16x256xf32>
    %cst_18 = arith.constant 1.000000e+00 : f32
    %22 = vector.broadcast %cst_18 : f32 to vector<16x256xf32>
    %23 = arith.addf %22, %21 : vector<16x256xf32>
    %24 = arith.divf %22, %23 : vector<16x256xf32>
    %25 = vector.extract_strided_slice %24 {offsets = [0, 0], sizes = [16, 128], strides = [1, 1]} : vector<16x256xf32> to vector<16x128xf32>
    %26 = vector.extract_strided_slice %24 {offsets = [0, 128], sizes = [16, 128], strides = [1, 1]} : vector<16x256xf32> to vector<16x128xf32>
    %27 = arith.mulf %25, %6 : vector<16x128xf32>
    %28 = vector.extract_strided_slice %9 {offsets = [0, 256], sizes = [16, 128], strides = [1, 1]} : vector<16x384xf32> to vector<16x128xf32>
    %c0_19 = arith.constant 0 : index
    %c0_20 = arith.constant 0 : index
    %c0_21 = arith.constant 0 : index
    %29 = vector.load %arg6[%c0_19, %c0_20, %c0_21] : memref<1x128x128xf32, #tpu.memory_space<vmem>>, vector<1x128x128xf32>
    %30 = vector.shape_cast %29 : vector<1x128x128xf32> to vector<128x128xf32>
    %cst_22 = arith.constant dense<0.000000e+00> : vector<16x128xf32>
    %31 = tpu.matmul %27, %30, %cst_22 {dimension_numbers = #tpu.dot_dimension_numbers<[1], [0], [0], [1], [0, 0, 1, 1], [], []>} : vector<16x128xf32>, vector<128x128xf32>, vector<16x128xf32> -> vector<16x128xf32>
    %32 = arith.addf %28, %31 : vector<16x128xf32>
    %cst_23 = arith.constant dense<0.000000e+00> : vector<16x128xf32>
    %33 = tpu.matmul %3, %32, %cst_23 {dimension_numbers = #tpu.dot_dimension_numbers<[1], [0], [0], [1], [0, 0, 1, 1], [], []>} : vector<16x16xf32>, vector<16x128xf32>, vector<16x128xf32> -> vector<16x128xf32>
    %c0_24 = arith.constant 0 : index
    %c0_25 = arith.constant 0 : index
    %c0_26 = arith.constant 0 : index
    %34 = vector.load %arg8[%c0_24, %c0_25, %c0_26] : memref<1x1x128xf32, #tpu.memory_space<vmem>>, vector<1x1x128xf32>
    %35 = vector.shape_cast %34 : vector<1x1x128xf32> to vector<1x128xf32>
    %36 = vector.broadcast %35 : vector<1x128xf32> to vector<16x128xf32>
    %37 = arith.addf %33, %36 : vector<16x128xf32>
    %38 = arith.negf %37 : vector<16x128xf32>
    %39 = math.exp %38 : vector<16x128xf32>
    %cst_27 = arith.constant 1.000000e+00 : f32
    %40 = vector.broadcast %cst_27 : f32 to vector<16x128xf32>
    %41 = arith.addf %40, %39 : vector<16x128xf32>
    %42 = arith.divf %40, %41 : vector<16x128xf32>
    %43 = arith.mulf %26, %6 : vector<16x128xf32>
    %cst_28 = arith.constant 1.000000e+00 : f32
    %44 = vector.broadcast %cst_28 : f32 to vector<16x128xf32>
    %45 = arith.subf %44, %26 : vector<16x128xf32>
    %46 = arith.mulf %45, %42 : vector<16x128xf32>
    %47 = arith.addf %43, %46 : vector<16x128xf32>
    %c0_29 = arith.constant 0 : index
    %c0_30 = arith.constant 0 : index
    %c0_31 = arith.constant 0 : index
    %48 = vector.load %arg9[%c0_29, %c0_30, %c0_31] : memref<1x16x128xf32, #tpu.memory_space<vmem>>, vector<1x16x128xf32>
    %49 = vector.shape_cast %48 : vector<1x16x128xf32> to vector<16x128xf32>
    %50 = vector.shape_cast %47 : vector<16x128xf32> to vector<1x16x128xf32>
    tpu.vector_store %arg9[%c0_29, %c0_30, %c0_31], %50 {strides = array<i32>} : memref<1x16x128xf32, #tpu.memory_space<vmem>>, vector<1x16x128xf32>,
    %c0_32 = arith.constant 0 : index
    %c0_33 = arith.constant 0 : index
    %51 = vector.load %arg10[%c0_32, %c0_33] : memref<16x128xf32, #tpu.memory_space<vmem>>, vector<16x128xf32>
    tpu.vector_store %arg10[%c0_32, %c0_33], %47 {strides = array<i32>} : memref<16x128xf32, #tpu.memory_space<vmem>>, vector<16x128xf32>,
    return
  }
  func.func @transform_0(%arg0: i32) -> (i32, i32) {
    %c0_i32 = arith.constant 0 : i32
    %c0_i32_0 = arith.constant 0 : i32
    %c0_i32_1 = arith.constant 0 : i32
    return %c0_i32, %c0_i32_0 : i32, i32
  }
  func.func @transform_1(%arg0: i32) -> (i32, i32) {
    %c0_i32 = arith.constant 0 : i32
    %c0_i32_0 = arith.constant 0 : i32
    %c0_i32_1 = arith.constant 0 : i32
    return %c0_i32, %c0_i32_0 : i32, i32
  }
  func.func @transform_2(%arg0: i32) -> (i32, i32, i32) {
    %c0_i32 = arith.constant 0 : i32
    %c0_i32_0 = arith.constant 0 : i32
    %c0_i32_1 = arith.constant 0 : i32
    return %arg0, %c0_i32, %c0_i32_0 : i32, i32, i32
  }
  func.func @transform_3(%arg0: i32) -> (i32, i32, i32) {
    %c0_i32 = arith.constant 0 : i32
    %c0_i32_0 = arith.constant 0 : i32
    %c0_i32_1 = arith.constant 0 : i32
    return %arg0, %c0_i32, %c0_i32_0 : i32, i32, i32
  }
  func.func @transform_4(%arg0: i32) -> (i32, i32, i32) {
    %c0_i32 = arith.constant 0 : i32
    %c0_i32_0 = arith.constant 0 : i32
    %c0_i32_1 = arith.constant 0 : i32
    return %arg0, %c0_i32, %c0_i32_0 : i32, i32, i32
  }
  func.func @transform_5(%arg0: i32) -> (i32, i32, i32) {
    %c0_i32 = arith.constant 0 : i32
    %c0_i32_0 = arith.constant 0 : i32
    %c0_i32_1 = arith.constant 0 : i32
    return %arg0, %c0_i32, %c0_i32_0 : i32, i32, i32
  }
  func.func @transform_6(%arg0: i32) -> (i32, i32, i32) {
    %c0_i32 = arith.constant 0 : i32
    %c0_i32_0 = arith.constant 0 : i32
    %c0_i32_1 = arith.constant 0 : i32
    return %arg0, %c0_i32, %c0_i32_0 : i32, i32, i32
  }
  func.func @transform_7(%arg0: i32) -> (i32, i32, i32) {
    %c0_i32 = arith.constant 0 : i32
    %c0_i32_0 = arith.constant 0 : i32
    %c0_i32_1 = arith.constant 0 : i32
    return %arg0, %c0_i32, %c0_i32_0 : i32, i32, i32
  }
  func.func @transform_8(%arg0: i32) -> (i32, i32, i32) {
    %c0_i32 = arith.constant 0 : i32
    %c0_i32_0 = arith.constant 0 : i32
    %c0_i32_1 = arith.constant 0 : i32
    return %arg0, %c0_i32, %c0_i32_0 : i32, i32, i32
  }
}

</mosaic_0001>

<bundles_post_ra>
// kernel: tpu_custom_call.1
= control target key start
LH: loop header
LB: loop body
LE: loop exit
PB: predicated region body
PF: predicated region fallthrough
CT: control target
= control target key end

     0   :  { %s2059_s0 = inlined_call_operand.hbm [shape: f32[16,16], index: 0, kind: input, shape index: {}]   ;;  %s2060_s1 = inlined_call_operand.hbm [shape: f32[16,128], index: 1, kind: input, shape index: {}]   ;;  %s2061_s2 = inlined_call_operand.hbm [shape: f32[2,16,128], index: 2, kind: input, shape index: {}]   ;;  %s2062_s3 = inlined_call_operand.hbm [shape: f32[2,128,384], index: 3, kind: input, shape index: {}]   ;;  %s2063_s4 = inlined_call_operand.hbm [shape: f32[2,128,256], index: 4, kind: input, shape index: {}]   ;;  %s2064_s5 = inlined_call_operand.hbm [shape: f32[2,128,128], index: 5, kind: input, shape index: {}]   ;;  %s2065_s6 = inlined_call_operand.vmem [shape: f32[2,1,256], index: 6, kind: input, shape index: {}]   ;;  %s2066_s7 = inlined_call_operand.vmem [shape: f32[2,1,128], index: 7, kind: input, shape index: {}]   ;;  %s2067_s8 = inlined_call_operand.hbm [shape: f32[2,16,128], index: 8, kind: output, shape index: {}]  }
   0x1   :  { %2081 = sst [smem:[#allocation23_spill]] %s2059_s0 }
   0x2   :  { %2082 = sst [smem:[#allocation24_spill]] %s2061_s2 }
   0x3   :  { %2083 = sst [smem:[#allocation25_spill]] %s2062_s3 }
   0x4   :  { %2084 = sst [smem:[#allocation26_spill]] %s2065_s6 }
   0x5   :  { %2085 = sst [smem:[#allocation27_spill]] %s2066_s7 }
   0x6   :  { %2086 = sst [smem:[#allocation28_spill]] %s2067_s8 }
   0x7   :  { %13 = vsyncpa [#allocation4], 0 }
   0x8   :  { %14 = vsyncpa [#allocation7], 0 }
   0x9   :  { %15 = vsyncpa [#allocation5], 0 }
   0xa   :  { %17 = vsyncpa [#allocation5 + $0x1], 0  ;;  %s1636_s27 = smov 0   ;;  %s1638_s28 = smov 0  }
   0xb   :  { %s1640_s29 = smov 0   ;;  %s1642_s30 = smov 0  }
   0xc LB: > { %2087 = sst [smem:[#allocation17_spill]] %s1567_s27  ;;  %s1657_s9 = sadd.s32 4294967295, %s1579_s30   ;;  %s1579_s30 = sphi %s1642_s30, %s2122_s30   ;;  %s1575_s29 = sphi %s1640_s29, %s2124_s29   ;;  %s1571_s28 = sphi %s1638_s28, %s2126_s28   ;;  %s1567_s27 = sphi %s1636_s27, %s2125_s27  }
   0xd   : > { %2088 = sst [smem:[#allocation18_spill]] %s1575_s29  ;;  %s1162_s10 = sadd.s32 4294967294, %s1579_s30  }
   0xe   : > { %s1661_s11 = sadd.s32 1, %s1579_s30   ;;  %s72_s12 = sadd.s32 1, %s1575_s29 }
   0xf   : > { %2089 = sst [smem:[#allocation19_spill]] %s1661_s11  ;;  %s69_s13 = ssub.s32 %s1579_s30, %s1661_s11 }
  0x10   : > { %p79_p0 = scmp.ne.s32.totalorder %s1575_s29, %s1571_s28  ;;  %p70_p1 = scmp.eq.s32.totalorder %s69_s13, 0 }
  0x11   : > { %p80_p2 = scmp.eq.s32.totalorder %s1579_s30, 0  ;;  %p85_p3 = scmp.ne.s32.totalorder %s1571_s28, %s1567_s27 }
  0x12   : > { %p2077_p4 = scmp.eq.s32.totalorder %s1657_s9, 0  ;;  %p239_p7 = scmp.eq.s32.totalorder %s1657_s9, 1 }
  0x13   : > { %s1673_s14 = scalar_select %p70_p1, %s1575_s29, %s72_s12  }
  0x14   : > { %p1675_p5 = por %p80_p2, %p79_p0  ;;  %p1681_p6 = por %p2077_p4, %p85_p3 }
  0x15   : > { %2090 = sst [smem:[#allocation20_spill]] %s1673_s14  ;;  %p245_p8 = scmp.eq.s32.totalorder %s1162_s10, 1 }
  0x16   : > { %p1163_p9 = scmp.ge.s32.totalorder %s1579_s30, 1  ;;  %p252_p10 = scmp.lt.s32.totalorder %s1579_s30, 3 }
  0x17   : > { %p1688_p11 = por %p239_p7, %p79_p0  ;;  %p1692_p12 = por %p245_p8, %p85_p3 }
  0x18   : > { %p1696_p13 = pnand %p1163_p9, %p252_p10  ;;  %s2098_s0 = sld [smem:[#allocation23_spill]] }
  0x19   : > { %s2093_s17 = scalar_select %p1688_p11, 1, 0 }
  0x1a   : > { %s2095_s18 = scalar_select %p1692_p12, 1, 0 }
  0x1b   : > { %2094 = sst [smem:[#allocation21_spill]] %s2093_s17  ;;  %p1228_p0 = pneg %p1696_p13 }
  0x1c   : > { %2096 = sst [smem:[#allocation22_spill]] %s2095_s18  ;;  %s1581_s23 = smov [#allocation3]  }
  0x1d   : > { %s265_s24 = sshll.u32 %s1581_s23, 4  ;;  %p1708_p2 = pnand %p1228_p0, %p2077_p4  ;;  %s266_s24 = int_to_ptr.vmem [resolvable:$true] %s265_s24 }
  0x1e   : > { %s263_s22 = sshll.u32 %s2098_s0, 4  ;;  %p1254_p7 = scmp.lt.s32.totalorder %s1579_s30, 2  ;;  %s264_s22 = int_to_ptr.hbm [resolvable:$true] %s263_s22 }
  0x1f   : > { %s2072_s26 = smov 128   ;;  %s2074_s10 = smov 8  }
  0x20   : > { %1231 = dma.hbm_to_vmem [thread:$0]  (!%p1708_p2), %s264_s22, 256, %s266_s24, [#allocation4], %s2072_s26, %s2072_s26, %s2074_s10  }
  0x21   : > { %s293_s12 = sand.u32 1, %s1579_s30   ;;  %s1721_s13 = sand.u32 1, %s1575_s29  }
  0x22   : > { %s1167_s20 = sshll.u32 %s1721_s13, 4  ;;  %s1203_s21 = sshll.u32 %s1579_s30, 4 }
  0x23   : > { %s2100_s2 = sld [smem:[#allocation24_spill]]  ;;  %s297_s11 = scalar_lea.vmem [#allocation8], %s1167_s20 }
  0x24   : > { %s305_s18 = sshll.u32 %s297_s11, 4  ;;  %p1732_p8 = pnand %p1254_p7, %p1675_p5  ;;  %s306_s18 = int_to_ptr.vmem [resolvable:$true] %s305_s18 }
  0x25   : > { %s1207_s24 = smul.u32 384, %s1721_s13  ;;  %s1738_s10 = scalar_lea.sflag [#allocation4], %s293_s12 }
  0x26   : > { %s1208_s26 = smul.u32 384, %s1579_s30  ;;  %p1359_p10 = pneg %p1732_p8 }
  0x29   : > { %s302_s14 = scalar_lea.hbm %s2100_s2, %s1203_s21  ;;  %s1362_s15 = scalar_lea.hbm %s2100_s2, 32 }
  0x2a   : > { %s303_s27 = sshll.u32 %s302_s14, 4  ;;  %s304_s27 = int_to_ptr.hbm [resolvable:$true] %s303_s27 }
  0x2b   : > { %s1355_s29 = sshra.s32 %s304_s27, 4  ;;  %s1356_s29 = int_to_ptr.hbm [resolvable:$true] %s1355_s29 }
  0x2c   : > { %s1357_s0 = scalar_lea.hbm %s1356_s29, 16  ;;  %p1363_p5 = scmp.lt.s32.totalorder %s1356_s29, %s2100_s2 }
  0x2d   : > { %p1358_p9 = scmp.ne.s32.totalorder %s1356_s29, %s1357_s0  ;;  %p1364_p7 = scmp.lt.s32.totalorder %s1362_s15, %s1357_s0 }
  0x2f   : > { %p1360_p0 = pnand %p1359_p10, %p1358_p9  ;;  %p1365_p1 = por %p1364_p7, %p1363_p5 }
  0x31   : > { %p1361_p3 = pneg %p1360_p0 }
  0x33   : > { %p1366_p4 = pnand %p1365_p1, %p1361_p3 }
  0x35   : > { %1369 = shalt.err (!%p1366_p4)
}
  0x36   : > { %s2102_s12 = smov 8   ;;  %s2103_s23 = smov 128  }
  0x37   : > { %1238 = dma.hbm_to_vmem [thread:$0]  (!%p1732_p8), %s304_s27, 256, %s306_s18, %s1738_s10, %s2103_s23, %s2103_s23, %s2102_s12  }
  0x38   : > { %s2104_s3 = sld [smem:[#allocation25_spill]]  ;;  %s319_s20 = scalar_lea.vmem [#allocation9], %s1207_s24 }
  0x39   : > { %s327_s29 = sshll.u32 %s319_s20, 4  ;;  %s1171_s0 = sshll.u32 %s1721_s13, 8  ;;  %s328_s29 = int_to_ptr.vmem [resolvable:$true] %s327_s29 }
  0x3e   : > { %s324_s14 = scalar_lea.hbm %s2104_s3, %s1208_s26  ;;  %s1392_s18 = scalar_lea.hbm %s2104_s3, 768 }
  0x3f   : > { %s325_s8 = sshll.u32 %s324_s14, 4  ;;  %s326_s8 = int_to_ptr.hbm [resolvable:$true] %s325_s8 }
  0x40   : > { %s1385_s15 = sshra.s32 %s326_s8, 4  ;;  %s1386_s15 = int_to_ptr.hbm [resolvable:$true] %s1385_s15 }
  0x41   : > { %s1387_s21 = scalar_lea.hbm %s1386_s15, 384  ;;  %p1393_p9 = scmp.lt.s32.totalorder %s1386_s15, %s2104_s3 }
  0x42   : > { %p1388_p4 = scmp.ne.s32.totalorder %s1386_s15, %s1387_s21  ;;  %p1394_p0 = scmp.lt.s32.totalorder %s1392_s18, %s1387_s21 }
  0x44   : > { %p1390_p1 = pnand %p1388_p4, %p1359_p10  ;;  %p1395_p5 = por %p1394_p0, %p1393_p9 }
  0x46   : > { %p1391_p3 = pneg %p1390_p1 }
  0x48   : > { %p1396_p7 = pnand %p1395_p5, %p1391_p3 }
  0x4a   : > { %1399 = shalt.err (!%p1396_p7)
}
  0x4b   : > { %s1584_s24 = smov 384   ;;  %s1585_s11 = smov 24  }
  0x4c   : > { %1241 = dma.hbm_to_vmem [thread:$0]  (!%p1732_p8), %s326_s8, 6144, %s328_s29, %s1738_s10, %s1584_s24, %s1584_s24, %s1585_s11  }
  0x4d   : > { %s1204_s14 = sshll.u32 %s1579_s30, 8  ;;  %s341_s6 = scalar_lea.vmem [#allocation10], %s1171_s0 }
  0x4e   : > { %s346_s27 = scalar_lea.hbm %s2063_s4, %s1204_s14  ;;  %s349_s17 = sshll.u32 %s341_s6, 4  ;;  %s350_s17 = int_to_ptr.vmem [resolvable:$true] %s349_s17 }
  0x4f   : > { %s347_s15 = sshll.u32 %s346_s27, 4  ;;  %s277_s26 = sshll.u32 %s2060_s1, 4  ;;  %s348_s15 = int_to_ptr.hbm [resolvable:$true] %s347_s15  ;;  %s278_s26 = int_to_ptr.hbm [resolvable:$true] %s277_s26 }
  0x50   : > { %s1415_s3 = sshra.s32 %s348_s15, 4  ;;  %s1422_s0 = scalar_lea.hbm %s2063_s4, 512  ;;  %s1416_s3 = int_to_ptr.hbm [resolvable:$true] %s1415_s3 }
  0x51   : > { %s1417_s7 = scalar_lea.hbm %s1416_s3, 256  ;;  %p1423_p9 = scmp.lt.s32.totalorder %s1416_s3, %s2063_s4 }
  0x52   : > { %p1418_p4 = scmp.ne.s32.totalorder %s1416_s3, %s1417_s7  ;;  %p1424_p0 = scmp.lt.s32.totalorder %s1422_s0, %s1417_s7 }
  0x54   : > { %p1420_p1 = pnand %p1418_p4, %p1359_p10  ;;  %p1425_p5 = por %p1424_p0, %p1423_p9 }
  0x56   : > { %p1421_p3 = pneg %p1420_p1 }
  0x58   : > { %p1426_p7 = pnand %p1425_p5, %p1421_p3 }
  0x5a   : > { %1429 = shalt.err (!%p1426_p7)
}
  0x5b   : > { %s1586_s11 = smov 256   ;;  %s1587_s14 = smov 16  }
  0x5c   : > { %1244 = dma.hbm_to_vmem [thread:$0]  (!%p1732_p8), %s348_s15, 4096, %s350_s17, %s1738_s10, %s1586_s11, %s1586_s11, %s1587_s14  }
  0x5d   : > { %s1588_s20 = smov [#allocation6]   ;;  %s1174_s27 = sshll.u32 %s1721_s13, 7 }
  0x5e   : > { %s279_s2 = sshll.u32 %s1588_s20, 4  ;;  %s1205_s3 = sshll.u32 %s1579_s30, 7  ;;  %s280_s2 = int_to_ptr.vmem [resolvable:$true] %s279_s2 }
  0x5f   : > { %1234 = dma.hbm_to_vmem [thread:$0]  (!%p1708_p2), %s278_s26, 256, %s280_s2, [#allocation7], %s2103_s23, %s2103_s23, %s2102_s12  }
  0x60   : > { %s363_s7 = scalar_lea.vmem [#allocation11], %s1174_s27  ;;  %s368_s29 = scalar_lea.hbm %s2064_s5, %s1205_s3 }
  0x61   : > { %s371_s21 = sshll.u32 %s363_s7, 4  ;;  %s369_s17 = sshll.u32 %s368_s29, 4  ;;  %s372_s21 = int_to_ptr.vmem [resolvable:$true] %s371_s21  ;;  %s370_s17 = int_to_ptr.hbm [resolvable:$true] %s369_s17 }
  0x62   : > { %s1475_s15 = sshra.s32 %s370_s17, 4  ;;  %s1482_s26 = scalar_lea.hbm %s2064_s5, 256  ;;  %s1476_s15 = int_to_ptr.hbm [resolvable:$true] %s1475_s15 }
  0x63   : > { %s1477_s0 = scalar_lea.hbm %s1476_s15, 128  ;;  %p1483_p2 = scmp.lt.s32.totalorder %s1476_s15, %s2064_s5 }
  0x64   : > { %p1478_p4 = scmp.ne.s32.totalorder %s1476_s15, %s1477_s0  ;;  %p1484_p9 = scmp.lt.s32.totalorder %s1482_s26, %s1477_s0 }
  0x66   : > { %p1480_p1 = pnand %p1478_p4, %p1359_p10  ;;  %p1485_p0 = por %p1484_p9, %p1483_p2 }
  0x68   : > { %p1481_p3 = pneg %p1480_p1 }
  0x6a   : > { %p1486_p5 = pnand %p1485_p0, %p1481_p3 }
  0x6c   : > { %1489 = shalt.err (!%p1486_p5)
}
  0x6d   : > { %1247 = dma.hbm_to_vmem [thread:$0]  (!%p1732_p8), %s370_s17, 2048, %s372_s21, %s1738_s10, %s2103_s23, %s2103_s23, %s2102_s12  }
  0x6e   : > { %396 = sbr.rel (%p1696_p13) target bundleno = 793 (0x319), region = 52  ;;  %p2105_p10 = scmp.eq.s32.totalorder (!%p1696_p13), %s1657_s9, 0 }
  0x73   : > { %1550 = dma.done.wait (%p2105_p10), [#allocation4], 256   ;;  %p2106_p7 = pmov %p2105_p10 }
  0x75   : > { %1552 = vsyncadd (%p2106_p7), [#allocation4], 4294967040  ;;  %p2107_p4 = pmov %p2106_p7 }
  0x77   : > { %1554 = dma.done.wait (%p2107_p4), [#allocation7], 256   ;;  %p2108_p1 = pmov %p2107_p4 }
  0x78   : > { %s408_s22 = sand.u32 1, %s1657_s9   ;;  %s1829_s10 = sand.u32 1, %s1571_s28  }
  0x79   : > { %1556 = vsyncadd (%p2108_p1), [#allocation7], 4294967040  ;;  %s1180_s19 = sshll.u32 %s1829_s10, 4  ;;  %s409_s12 = scalar_lea.sflag [#allocation4], %s408_s22 }
  0x7a   : > { %s1832_s23 = scalar_lea.vmem [#allocation8], %s1180_s19 }
  0x7b   : > { %1558 = dma.done.wait (%p1681_p6), %s409_s12, 12544  }
  0x7c   : > { %1560 = vsyncadd (%p1681_p6), %s409_s12, 4294954752  ;;  %s1209_s11 = smul.u32 384, %s1829_s10  ;;  %s1181_s14 = sshll.u32 %s1829_s10, 8 }
  0x7d   : > { %s1182_s20 = sshll.u32 %s1829_s10, 7  ;;  %p498_p13 = scmp.lt.s32.totalorder %s1657_s9, 1 }
  0x7e   : > { %s2109_s21 = sld [smem:[#allocation27_spill]]  ;;  %s1855_s15 = scalar_lea.vmem [#allocation9], %s1209_s11 }
  0x7f   : > { %s1843_s2 = scalar_select %p498_p13, %s1657_s9, 1 }
  0x80   : > { %s2110_s29 = sld [smem:[#allocation26_spill]]  ;;  %s1857_s0 = scalar_lea.vmem [#allocation10], %s1181_s14 }
  0x81   : > { %s1184_s27 = sshll.u32 %s1843_s2, 1  ;;  %s1859_s25 = scalar_lea.vmem [#allocation11], %s1182_s20 }
  0x82   : > { %s1861_s13 = scalar_lea.vmem [#allocation12], %s1180_s19  ;;  %p2111_p6 = scmp.ne.s32.totalorder %s1657_s9, 0 }
  0x84   : > { %s504_s18 = scalar_lea.vmem %s2109_s21, %s1843_s2  ;;  %508 = sbr.rel (%p2111_p6) target bundleno = 140 (0x8c), region = 80 }
  0x86   : > { %s1853_s17 = scalar_lea.vmem %s2110_s29, %s1184_s27 }
  0x89   : > { %v509_v0 = vld [vmem:[#allocation6] sm:$0xff]  ;;  %v510_v1 = vld [vmem:[#allocation6 + $0x8] sm:$0xff] }
  0x8a   : > { %511 = vst [vmem:[#allocation2] sm:$0xff] %v509_v0 }
  0x8b   : > { %512 = vst [vmem:[#allocation2 + $0x8] sm:$0xff] %v510_v1 }
  0x8c PF: > { %v666_v2 = vld [vmem:[%s1857_s0 + $0xf0] sm:$0xff]  ;;  %v664_v3 = vld [vmem:[%s1857_s0 + $0xe0] sm:$0xff]  ;;  %v564_v4 = vld [vmem:[%s1855_s15 + $0x168] sm:$0xff]  ;;  %vm724_vm0 = vcmask 130048   ;;  %s1206_s22 = sshll.u32 %s1657_s9, 4  ;;  %s986_s14 = sshll.u32 %s1861_s13, 4  ;;  %s987_s14 = int_to_ptr.vmem [resolvable:$true] %s986_s14 }
  0x8d   : > { %668 = vmatpush.msra.mxu3 %v666_v2  ;;  %v561_v5 = vld [vmem:[%s1855_s15 + $0x150] sm:$0xff]  ;;  %567 = vmatpush.msra.mxu0 %v564_v4  ;;  %v558_v7 = vld [vmem:[%s1855_s15 + $0x138] sm:$0xff]  ;;  %v660_v8 = vld [vmem:[%s1857_s0 + $0xc0] sm:$0xff]  ;;  %s974_s2 = scalar_lea.sflag [#allocation5], %s1829_s10 }
  0x8e   : > { %v662_v6 = vld [vmem:[%s1857_s0 + $0xd0] sm:$0xff]  ;;  %v555_v9 = vld [vmem:[%s1855_s15 + $0x120] sm:$0xff]  ;;  %v552_v11 = vld [vmem:[%s1855_s15 + $0x108] sm:$0xff] }
  0x8f   : > { %669 = vmatpush.msra.mxu3 %v664_v3  ;;  %568 = vmatpush.msra.mxu0 %v561_v5  ;;  %v658_v10 = vld [vmem:[%s1857_s0 + $0xb0] sm:$0xff]  ;;  %v656_v12 = vld [vmem:[%s1857_s0 + $0xa0] sm:$0xff]  ;;  %v546_v15 = vld [vmem:[%s1855_s15 + $0xd8] sm:$0xff] }
  0x90   : > { %v549_v13 = vld [vmem:[%s1855_s15 + $0xf0] sm:$0xff]  ;;  %v652_v16 = vld [vmem:[%s1857_s0 + $0x80] sm:$0xff]  ;;  %v562_v18 = vld [vmem:[%s1855_s15 + $0x158] sm:$0xff] }
  0x91   : > { %670 = vmatpush.msra.mxu3 %v662_v6  ;;  %569 = vmatpush.msra.mxu0 %v558_v7  ;;  %v654_v14 = vld [vmem:[%s1857_s0 + $0x90] sm:$0xff]  ;;  %v543_v19 = vld [vmem:[%s1855_s15 + $0xc0] sm:$0xff]  ;;  %v540_v22 = vld [vmem:[%s1855_s15 + $0xa8] sm:$0xff] }
  0x92   : > { %v565_v17 = vld [vmem:[%s1855_s15 + $0x170] sm:$0xff]  ;;  %v559_v21 = vld [vmem:[%s1855_s15 + $0x140] sm:$0xff]  ;;  %v556_v24 = vld [vmem:[%s1855_s15 + $0x128] sm:$0xff] }
  0x93   : > { %671 = vmatpush.msra.mxu3 %v660_v8  ;;  %570 = vmatpush.msra.mxu0 %v555_v9  ;;  %v650_v20 = vld [vmem:[%s1857_s0 + $0x70] sm:$0xff]  ;;  %v648_v23 = vld [vmem:[%s1857_s0 + $0x60] sm:$0xff]  ;;  %v534_v28 = vld [vmem:[%s1855_s15 + $0x78] sm:$0xff] }
  0x94   : > { %590 = vmatpush.msra.mxu1 %v565_v17  ;;  %v537_v25 = vld [vmem:[%s1855_s15 + $0x90] sm:$0xff]  ;;  %v644_v29 = vld [vmem:[%s1857_s0 + $0x40] sm:$0xff]  ;;  %v550_v30 = vld [vmem:[%s1855_s15 + $0xf8] sm:$0xff] }
  0x95   : > { %672 = vmatpush.msra.mxu3 %v658_v10  ;;  %571 = vmatpush.msra.mxu0 %v552_v11  ;;  %v646_v26 = vld [vmem:[%s1857_s0 + $0x50] sm:$0xff]  ;;  %v531_v31 = vld [vmem:[%s1855_s15 + $0x60] sm:$0xff]  ;;  %v528_v34 = vld [vmem:[%s1855_s15 + $0x48] sm:$0xff] }
  0x96   : > { %591 = vmatpush.msra.mxu1 %v562_v18  ;;  %v553_v27 = vld [vmem:[%s1855_s15 + $0x110] sm:$0xff]  ;;  %v547_v33 = vld [vmem:[%s1855_s15 + $0xe0] sm:$0xff]  ;;  %v544_v36 = vld [vmem:[%s1855_s15 + $0xc8] sm:$0xff] }
  0x97   : > { %673 = vmatpush.msra.mxu3 %v656_v12  ;;  %572 = vmatpush.msra.mxu0 %v549_v13  ;;  %v642_v32 = vld [vmem:[%s1857_s0 + $0x30] sm:$0xff]  ;;  %v640_v35 = vld [vmem:[%s1857_s0 + $0x20] sm:$0xff]  ;;  %v522_v40 = vld [vmem:[%s1855_s15 + $0x18] sm:$0xff] }
  0x98   : > { %592 = vmatpush.msra.mxu1 %v559_v21  ;;  %v525_v37 = vld [vmem:[%s1855_s15 + $0x30] sm:$0xff]  ;;  %v636_v41 = vld [vmem:[%s1857_s0] sm:$0xff]  ;;  %v538_v42 = vld [vmem:[%s1855_s15 + $0x98] sm:$0xff] }
  0x99   : > { %674 = vmatpush.msra.mxu3 %v654_v14  ;;  %573 = vmatpush.msra.mxu0 %v546_v15  ;;  %v638_v38 = vld [vmem:[%s1857_s0 + $0x10] sm:$0xff]  ;;  %v519_v44 = vld [vmem:[%s1855_s15] sm:$0xff]  ;;  %v667_v47 = vld [vmem:[%s1857_s0 + $0xf8] sm:$0xff] }
  0x9a   : > { %593 = vmatpush.msra.mxu1 %v556_v24  ;;  %v541_v39 = vld [vmem:[%s1855_s15 + $0xb0] sm:$0xff]  ;;  %v535_v46 = vld [vmem:[%s1855_s15 + $0x80] sm:$0xff]  ;;  %v532_v48 = vld [vmem:[%s1855_s15 + $0x68] sm:$0xff] }
  0x9b   : > { %675 = vmatpush.msra.mxu3 %v652_v16  ;;  %574 = vmatpush.msra.mxu0 %v543_v19  ;;  %v1907_v43 = vld [vmem:[%s1832_s23] sm:$0xff]  ;;  %v665_v49 = vld [vmem:[%s1857_s0 + $0xe8] sm:$0xff]  ;;  %v663_v51 = vld [vmem:[%s1857_s0 + $0xd8] sm:$0xff] }
  0x9c   : > { %594 = vmatpush.msra.mxu1 %v553_v27  ;;  %v1910_v45 = vld [vmem:[#allocation2] sm:$0xff]  ;;  %v526_v52 = vld [vmem:[%s1855_s15 + $0x38] sm:$0xff]  ;;  %v661_v54 = vld [vmem:[%s1857_s0 + $0xc8] sm:$0xff] }
  0x9d   : > { %676 = vmatpush.msra.mxu3 %v650_v20  ;;  %575 = vmatpush.msra.mxu0 %v540_v22  ;;  %v529_v50 = vld [vmem:[%s1855_s15 + $0x50] sm:$0xff]  ;;  %v1922_v53 = vld [vmem:[%s1832_s23 + $0x8] sm:$0xff]  ;;  %v523_v56 = vld [vmem:[%s1855_s15 + $0x20] sm:$0xff]  ;;  %s2117_s23 = sld [smem:[#allocation28_spill]] }
  0x9e   : > { %595 = vmatpush.msra.mxu1 %v550_v30  ;;  %v1925_v55 = vld [vmem:[#allocation2 + $0x8] sm:$0xff]  ;;  %v520_v58 = vld [vmem:[%s1855_s15 + $0x8] sm:$0xff]  ;;  %v563_v7 = vld [vmem:[%s1855_s15 + $0x160] sm:$0xff] }
  0x9f   : > { %677 = vmatpush.msra.mxu3 %v648_v23  ;;  %576 = vmatpush.msra.mxu0 %v537_v25  ;;  %v659_v57 = vld [vmem:[%s1857_s0 + $0xb8] sm:$0xff]  ;;  %v657_v59 = vld [vmem:[%s1857_s0 + $0xa8] sm:$0xff]  ;;  %v557_v9 = vld [vmem:[%s1855_s15 + $0x130] sm:$0xff] }
  0xa0   : > { %596 = vmatpush.msra.mxu1 %v547_v33  ;;  %v655_v60 = vld [vmem:[%s1857_s0 + $0x98] sm:$0xff]  ;;  %v653_v61 = vld [vmem:[%s1857_s0 + $0x88] sm:$0xff]  ;;  %v551_v12 = vld [vmem:[%s1855_s15 + $0x100] sm:$0xff] }
  0xa1   : > { %678 = vmatpush.msra.mxu3 %v646_v26  ;;  %577 = vmatpush.msra.mxu0 %v534_v28  ;;  %v651_v62 = vld [vmem:[%s1857_s0 + $0x78] sm:$0xff]  ;;  %v649_v63 = vld [vmem:[%s1857_s0 + $0x68] sm:$0xff]  ;;  %v545_v15 = vld [vmem:[%s1855_s15 + $0xd0] sm:$0xff] }
  0xa2   : > { %597 = vmatpush.msra.mxu1 %v544_v36  ;;  %v647_v0 = vld [vmem:[%s1857_s0 + $0x58] sm:$0xff]  ;;  %v645_v1 = vld [vmem:[%s1857_s0 + $0x48] sm:$0xff]  ;;  %v539_v18 = vld [vmem:[%s1855_s15 + $0xa0] sm:$0xff] }
  0xa3   : > { %679 = vmatpush.msra.mxu3 %v644_v29  ;;  %578 = vmatpush.msra.mxu0 %v531_v31  ;;  %v643_v2 = vld [vmem:[%s1857_s0 + $0x38] sm:$0xff]  ;;  %v641_v3 = vld [vmem:[%s1857_s0 + $0x28] sm:$0xff]  ;;  %v533_v22 = vld [vmem:[%s1855_s15 + $0x70] sm:$0xff]  ;;  %s985_s11 = scalar_lea.hbm %s2117_s23, %s1206_s22 }
  0xa4   : > { %598 = vmatpush.msra.mxu1 %v541_v39  ;;  %v639_v4 = vld [vmem:[%s1857_s0 + $0x18] sm:$0xff]  ;;  %v637_v5 = vld [vmem:[%s1857_s0 + $0x8] sm:$0xff]  ;;  %v1959_v24 = vld [vmem:[#allocation3] sm:$0xff]  ;;  %s988_s20 = sshll.u32 %s985_s11, 4  ;;  %s989_s20 = int_to_ptr.hbm [resolvable:$true] %s988_s20 }
  0xa5   : > { %680 = vmatpush.msra.mxu3 %v642_v32  ;;  %579 = vmatpush.msra.mxu0 %v528_v34  ;;  %v566_v6 = vld [vmem:[%s1855_s15 + $0x178] sm:$0xff]  ;;  %v560_v8 = vld [vmem:[%s1855_s15 + $0x148] sm:$0xff]  ;;  %v527_v26 = vld [vmem:[%s1855_s15 + $0x40] sm:$0xff]  ;;  %s1519_s27 = sshra.s32 %s989_s20, 4  ;;  %s1520_s27 = int_to_ptr.hbm [resolvable:$true] %s1519_s27 }
  0xa6   : > { %599 = vmatpush.msra.mxu1 %v538_v42  ;;  %613 = vmatpush.msra.mxu2 %v566_v6  ;;  %v554_v11 = vld [vmem:[%s1855_s15 + $0x118] sm:$0xff]  ;;  %v548_v14 = vld [vmem:[%s1855_s15 + $0xe8] sm:$0xff]  ;;  %v521_v28 = vld [vmem:[%s1855_s15 + $0x10] sm:$0xff]  ;;  %s1521_s3 = scalar_lea.hbm %s1520_s27, 16  ;;  %p1526_p9 = scmp.lt.s32.totalorder %s1520_s27, %s2117_s23 }
  0xa7   : > { %681 = vmatpush.msra.mxu3 %v640_v35  ;;  %580 = vmatpush.msra.mxu0 %v525_v37  ;;  %v542_v16 = vld [vmem:[%s1855_s15 + $0xb8] sm:$0xff]  ;;  %v536_v20 = vld [vmem:[%s1855_s15 + $0x88] sm:$0xff]  ;;  %v869_v37 = vld [vmem:[%s1859_s25 + $0x70] sm:$0xff]  ;;  %p1522_p8 = scmp.ne.s32.totalorder %s1520_s27, %s1521_s3 }
  0xa8   : > { %600 = vmatpush.msra.mxu1 %v535_v46  ;;  %614 = vmatpush.msra.mxu2 %v563_v7  ;;  %v530_v25 = vld [vmem:[%s1855_s15 + $0x58] sm:$0xff]  ;;  %v524_v27 = vld [vmem:[%s1855_s15 + $0x28] sm:$0xff]  ;;  %v867_v39 = vld [vmem:[%s1859_s25 + $0x60] sm:$0xff] }
  0xa9   : > { %682 = vmatpush.msra.mxu3 %v638_v38  ;;  %581 = vmatpush.msra.mxu0 %v522_v40  ;;  %v1967_v29 = vld [vmem:[#allocation3 + $0x8] sm:$0xff]  ;;  %v870_v36 = vld [vmem:[%s1859_s25 + $0x78] sm:$0xff]  ;;  %v861_v46 = vld [vmem:[%s1859_s25 + $0x30] sm:$0xff]  ;;  %p1523_p3 = pnand %p1522_p8, %p1688_p11 }
  0xaa   : > { %601 = vmatpush.msra.mxu1 %v532_v48  ;;  %615 = vmatpush.msra.mxu2 %v560_v8  ;;  %v868_v38 = vld [vmem:[%s1859_s25 + $0x68] sm:$0xff]  ;;  %v866_v40 = vld [vmem:[%s1859_s25 + $0x58] sm:$0xff]  ;;  %v859_v48 = vld [vmem:[%s1859_s25 + $0x20] sm:$0xff] }
  0xab   : > { %683 = vmatpush.msra.mxu3 %v636_v41  ;;  %582 = vmatpush.msra.mxu0 %v519_v44  ;;  %v865_v41 = vld [vmem:[%s1859_s25 + $0x50] sm:$0xff]  ;;  %v864_v42 = vld [vmem:[%s1859_s25 + $0x48] sm:$0xff]  ;;  %v863_v44 = vld [vmem:[%s1859_s25 + $0x40] sm:$0xff]  ;;  %p1524_p2 = pneg %p1523_p3 }
  0xac   : > { %684 = vmatmul.f32.vlgmr.msra.gmra.mxu3 %v1907_v43  ;;  %583 = vmatmul.f32.vlgmr.msra.gmra.mxu0 %v1910_v45 }
  0xad   : > { %691 = vmatpush.msrb.mxu0 %v667_v47  ;;  %602 = vmatpush.msra.mxu1 %v529_v50  ;;  %v860_v47 = vld [vmem:[%s1859_s25 + $0x28] sm:$0xff]  ;;  %v857_v50 = vld [vmem:[%s1859_s25 + $0x10] sm:$0xff] }
  0xae   : > { %616 = vmatpush.msra.mxu2 %v557_v9  ;;  %871 = vmatpush.msrb.mxu3 %v870_v36 }
  0xaf   : > { %692 = vmatpush.msrb.mxu0 %v665_v49  ;;  %603 = vmatpush.msra.mxu1 %v526_v52  ;;  %v858_v49 = vld [vmem:[%s1859_s25 + $0x18] sm:$0xff]  ;;  %v856_v52 = vld [vmem:[%s1859_s25 + $0x8] sm:$0xff] }
  0xb0   : > { %617 = vmatpush.msra.mxu2 %v554_v11  ;;  %872 = vmatpush.msrb.mxu3 %v869_v37 }
  0xb1   : > { %693 = vmatpush.msrb.mxu0 %v663_v51  ;;  %604 = vmatpush.msra.mxu1 %v523_v56  ;;  %v1992_v51 = vld [vmem:[%s1853_s17] sm:$0x3] }
  0xb2   : > { %618 = vmatpush.msra.mxu2 %v551_v12  ;;  %873 = vmatpush.msrb.mxu3 %v868_v38 }
  0xb3   : > { %694 = vmatpush.msrb.mxu0 %v661_v54  ;;  %605 = vmatpush.msra.mxu1 %v520_v58  ;;  %v720_v54 = vperm.slane %v1992_v51, 0 }
  0xb4   : > { %687 = vmatmul.f32.gmra.mxu3 %v1922_v53  ;;  %586 = vmatmul.f32.gmra.mxu0 %v1925_v55 }
  0xb5   : > { %695 = vmatpush.msrb.mxu0 %v659_v57  ;;  %606 = vmatmul.f32.vlgmr.msra.gmra.mxu1 %v1910_v45 }
  0xb6   : > { %619 = vmatpush.msra.mxu2 %v548_v14  ;;  %874 = vmatpush.msrb.mxu3 %v867_v39 }
  0xb7   : > { %696 = vmatpush.msrb.mxu0 %v657_v59 }
  0xb8   : > { %620 = vmatpush.msra.mxu2 %v545_v15  ;;  %875 = vmatpush.msrb.mxu3 %v866_v40 }
  0xb9   : > { %697 = vmatpush.msrb.mxu0 %v655_v60 }
  0xba   : > { %621 = vmatpush.msra.mxu2 %v542_v16  ;;  %876 = vmatpush.msrb.mxu3 %v865_v41 }
  0xbb   : > { %698 = vmatpush.msrb.mxu0 %v653_v61 }
  0xbc   : > { %622 = vmatpush.msra.mxu2 %v539_v18  ;;  %877 = vmatpush.msrb.mxu3 %v864_v42 }
  0xbd   : > { %699 = vmatpush.msrb.mxu0 %v651_v62  ;;  %609 = vmatmul.f32.gmra.mxu1 %v1925_v55 }
  0xbe   : > { %623 = vmatpush.msra.mxu2 %v536_v20  ;;  %878 = vmatpush.msrb.mxu3 %v863_v44 }
  0xbf   : > { %700 = vmatpush.msrb.mxu0 %v649_v63 }
  0xc0   : > { %624 = vmatpush.msra.mxu2 %v533_v22 }
  0xc1   : > { %701 = vmatpush.msrb.mxu0 %v647_v0 }
  0xc2   : > { %625 = vmatpush.msra.mxu2 %v530_v25 }
  0xc3   : > { %702 = vmatpush.msrb.mxu0 %v645_v1 }
  0xc4   : > { %626 = vmatpush.msra.mxu2 %v527_v26 }
  0xc5   : > { %703 = vmatpush.msrb.mxu0 %v643_v2 }
  0xc6   : > { %627 = vmatpush.msra.mxu2 %v524_v27 }
  0xc7   : > { %704 = vmatpush.msrb.mxu0 %v641_v3 }
  0xc8   : > { %628 = vmatpush.msra.mxu2 %v521_v28 }
  0xc9   : > { %705 = vmatpush.msrb.mxu0 %v639_v4  ;;  %629 = vmatmul.f32.vlgmr.msra.gmra.mxu2 %v1910_v45  ;;  %v862_v45 = vld [vmem:[%s1859_s25 + $0x38] sm:$0xff] }
  0xca   : > { %879 = vmatpush.msrb.mxu3 %v862_v45 }
  0xcb   : > { %706 = vmatpush.msrb.mxu0 %v637_v5 }
  0xcc   : > { %707 = vmatmul.f32.vlgmr.msrb.gmra.mxu0 %v1907_v43  ;;  %880 = vmatpush.msrb.mxu3 %v861_v46 }
  0xce   : > { %881 = vmatpush.msrb.mxu3 %v860_v47 }
  0xd0   : > { %882 = vmatpush.msrb.mxu3 %v859_v48 }
  0xd1   : > { %632 = vmatmul.f32.gmra.mxu2 %v1925_v55  ;;  %v855_v55 = vld [vmem:[%s1859_s25] sm:$0xff] }
  0xd2   : > { %883 = vmatpush.msrb.mxu3 %v858_v49 }
  0xd4   : > { %710 = vmatmul.f32.gmra.mxu0 %v1922_v53  ;;  %884 = vmatpush.msrb.mxu3 %v857_v50 }
  0xd6   : > { %885 = vmatpush.msrb.mxu3 %v856_v52 }
  0xd8   : > { %886 = vmatpush.msrb.mxu3 %v855_v55 }
 0x129   : > { %v584_v10 = vpop.f32.mrf.mxu0 }
 0x12f   : > { %v685_v13 = vpop.f32.mrf.mxu3 }
 0x130   : > { %v714_v23 = vadd.f32 %v685_v13, %v584_v10 }
 0x131   : > { %v587_v17 = vpop.f32.mrf.mxu0 }
 0x132   : > { %v607_v30 = vpop.f32.mrf.mxu1 }
 0x137   : > { %v688_v19 = vpop.f32.mrf.mxu3 }
 0x138   : > { %v716_v21 = vadd.f32 %v688_v19, %v587_v17 }
 0x13a   : > { %745 = vmatpush.msrb.mxu1 %v716_v21  ;;  %v610_v32 = vpop.f32.mrf.mxu1 }
 0x13c   : > { %746 = vmatpush.msrb.mxu1 %v714_v23 }
 0x13d   : > { %1186 = vmatmul.msk.f32.vlgmr.msrb.gmra.mxu1 %vm724_vm0, %v1959_v24 }
 0x145   : > { %1187 = vmatmul.msk.f32.gmra.mxu1 %vm724_vm0, %v1967_v29 }
 0x149   : > { %v708_v31 = vpop.f32.mrf.mxu0 }
 0x14a   : > { %v715_v34 = vadd.f32 %v708_v31, %v607_v30 }
 0x14c   : > { %v630_v25 = vpop.f32.mrf.mxu2 }
 0x151   : > { %v711_v33 = vpop.f32.mrf.mxu0 }
 0x152   : > { %v717_v35 = vadd.f32 %v711_v33, %v610_v32  ;;  %v721_v33 = vperm.slane %v1992_v51, 1 }
 0x154   : > { %768 = vmatpush.msrb.mxu2 %v717_v35  ;;  %v633_v27 = vpop.f32.mrf.mxu2 }
 0x156   : > { %769 = vmatpush.msrb.mxu2 %v715_v34 }
 0x157   : > { %1188 = vmatmul.msk.f32.vlgmr.msrb.gmra.mxu2 %vm724_vm0, %v1959_v24 }
 0x15f   : > { %1189 = vmatmul.msk.f32.gmra.mxu2 %vm724_vm0, %v1967_v29 }
 0x1ba   : > { %v748_v56 = vpop.f32.mrf.mxu1 }
 0x1bb   : > { %v749_v57 = vadd.f32 %v748_v56, %v720_v54 }
 0x1bd   : > { %v1190_v58 = vmul.f32 -1.442695, %v749_v57 }
 0x1bf   : > { %1301 = vpow2.f32 %v1190_v58 }
 0x1c2   : > { %v751_v59 = vpop.f32.mrf.mxu1 }
 0x1c3   : > { %v752_v60 = vadd.f32 %v751_v59, %v720_v54 }
 0x1c5   : > { %v1302_v61 = vpop.eup %1301  ;;  %v1192_v62 = vmul.f32 -1.442695, %v752_v60 }
 0x1c6   : > { %v789_v63 = vadd.f32 1.0, %v1302_v61 }
 0x1c7   : > { %1303 = vpow2.f32 %v1192_v62 }
 0x1c8   : > { %1305 = vrcp.f32 %v789_v63  ;;  %v804_v5 = vand.u32 2147483648, %v789_v63  ;;  %v802_v7 = vand.u32 2147483647, %v789_v63  ;;  %vm798_vm2 = vweird.f32 %v789_v63 }
 0x1ca   : > { %v805_v10 = vor.u32 1.1754944e-38, %v804_v5  ;;  %vm803_vm4 = vcmp.eq.f32.partialorder %v802_v7, 8.507059e+37 }
 0x1cd   : > { %v1304_v0 = vpop.eup %1303 }
 0x1ce   : > { %v1306_v1 = vpop.eup %1305  ;;  %v791_v2 = vadd.f32 1.0, %v1304_v0 }
 0x1cf   : > { %v794_v3 = vmul.f32 %v1306_v1, %v789_v63  ;;  %vm799_vm1 = vweird.f32 %v1306_v1 }
 0x1d0   : > { %1307 = vrcp.f32 %v791_v2  ;;  %vm800_vm3 = vmor %vm798_vm2, %vm799_vm1  ;;  %v834_v16 = vand.u32 2147483648, %v791_v2  ;;  %v832_v18 = vand.u32 2147483647, %v791_v2  ;;  %vm828_vm6 = vweird.f32 %v791_v2 }
 0x1d1   : > { %v795_v4 = vsub.f32 1.0, %v794_v3 }
 0x1d2   : > { %v835_v20 = vor.u32 1.1754944e-38, %v834_v16  ;;  %vm833_vm8 = vcmp.eq.f32.partialorder %v832_v18, 8.507059e+37 }
 0x1d3   : > { %v796_v6 = vmul.f32 %v1306_v1, %v795_v4 }
 0x1d5   : > { %v797_v8 = vadd.f32 %v1306_v1, %v796_v6 }
 0x1d6   : > { %v1308_v9 = vpop.eup %1307 }
 0x1d7   : > { %v801_v11 = vsel %vm800_vm3, %v1306_v1, %v797_v8  ;;  %v824_v12 = vmul.f32 %v1308_v9, %v791_v2  ;;  %vm829_vm5 = vweird.f32 %v1308_v9 }
 0x1d8   : > { %v806_v13 = vsel %vm803_vm4, %v805_v10, %v801_v11  ;;  %vm830_vm7 = vmor %vm828_vm6, %vm829_vm5 }
 0x1d9   : > { %v853_v14 = vmul.f32 %v806_v13, %v1907_v43  ;;  %v825_v15 = vsub.f32 1.0, %v824_v12 }
 0x1da   : > { %v771_v32 = vpop.f32.mrf.mxu2 }
 0x1db   : > { %887 = vmatmul.f32.vlgmr.msrb.gmra.mxu3 %v853_v14  ;;  %v826_v17 = vmul.f32 %v1308_v9, %v825_v15  ;;  %v772_v34 = vadd.f32 %v771_v32, %v721_v33 }
 0x1dd   : > { %v827_v19 = vadd.f32 %v1308_v9, %v826_v17  ;;  %v1191_v35 = vmul.f32 -1.442695, %v772_v34 }
 0x1df   : > { %v831_v21 = vsel %vm830_vm7, %v1308_v9, %v827_v19  ;;  %1309 = vpow2.f32 %v1191_v35 }
 0x1e0   : > { %v836_v22 = vsel %vm833_vm8, %v835_v20, %v831_v21 }
 0x1e1   : > { %v854_v23 = vmul.f32 %v836_v22, %v1922_v53 }
 0x1e2   : > { %v774_v36 = vpop.f32.mrf.mxu2 }
 0x1e3   : > { %890 = vmatmul.f32.gmra.mxu3 %v854_v23  ;;  %v775_v37 = vadd.f32 %v774_v36, %v721_v33 }
 0x1e5   : > { %v1193_v38 = vmul.f32 -1.442695, %v775_v37  ;;  %v1310_v39 = vpop.eup %1309 }
 0x1e6   : > { %v790_v40 = vadd.f32 1.0, %v1310_v39 }
 0x1e7   : > { %1311 = vpow2.f32 %v1193_v38 }
 0x1e8   : > { %1313 = vrcp.f32 %v790_v40  ;;  %vm813_vm9 = vweird.f32 %v790_v40  ;;  %v819_v58 = vand.u32 2147483648, %v790_v40  ;;  %v817_v61 = vand.u32 2147483647, %v790_v40 }
 0x1ea   : > { %v820_v3 = vor.u32 1.1754944e-38, %v819_v58  ;;  %vm818_vm12 = vcmp.eq.f32.partialorder %v817_v61, 8.507059e+37 }
 0x1ed   : > { %v1312_v41 = vpop.eup %1311 }
 0x1ee   : > { %v792_v44 = vadd.f32 1.0, %v1312_v41  ;;  %v1314_v46 = vpop.eup %1313 }
 0x1ef   : > { %v809_v47 = vmul.f32 %v1314_v46, %v790_v40  ;;  %vm814_vm10 = vweird.f32 %v1314_v46 }
 0x1f0   : > { %vm2009_vm11 = vmor %vm813_vm9, %vm814_vm10  ;;  %vm843_vm13 = vweird.f32 %v792_v44  ;;  %v849_v10 = vand.u32 2147483648, %v792_v44  ;;  %v847_v15 = vand.u32 2147483647, %v792_v44 }
 0x1f1   : > { %v810_v51 = vsub.f32 1.0, %v809_v47 }
 0x1f2   : > { %v850_v21 = vor.u32 1.1754944e-38, %v849_v10  ;;  %vm848_vm4 = vcmp.eq.f32.partialorder %v847_v15, 8.507059e+37 }
 0x1f3   : > { %v811_v56 = vmul.f32 %v1314_v46, %v810_v51 }
 0x1f5   : > { %v812_v60 = vadd.f32 %v1314_v46, %v811_v56 }
 0x1f7   : > { %v816_v6 = vsel %vm2009_vm11, %v1314_v46, %v812_v60 }
 0x1f8   : > { %v821_v11 = vsel %vm818_vm12, %v820_v3, %v816_v6 }
 0x1f9   : > { %v963_v20 = vsub.f32 1.0, %v821_v11  ;;  %v961_v23 = vmul.f32 %v821_v11, %v1907_v43 }
 0x25e   : > { %v888_v26 = vpop.f32.mrf.mxu3 }
 0x25f   : > { %v894_v31 = vadd.f32 %v888_v26, %v630_v25 }
 0x266   : > { %v891_v28 = vpop.f32.mrf.mxu3 }
 0x267   : > { %v895_v30 = vadd.f32 %v891_v28, %v633_v27 }
 0x269   : > { %914 = vmatpush.msra.mxu1 %v895_v30 }
 0x26b   : > { %915 = vmatpush.msra.mxu1 %v894_v31 }
 0x26c   : > { %1194 = vmatmul.msk.f32.vlgmr.msra.gmra.mxu1 %vm724_vm0, %v1959_v24  ;;  %v1300_v24 = vld [vmem:[%s504_s18] ss:$0 sm:$0xff]  ;;  %s1525_s18 = scalar_lea.hbm %s2117_s23, 32 }
 0x26d   : > { %p1527_p0 = scmp.lt.s32.totalorder %s1525_s18, %s1521_s3 }
 0x26f   : > { %p1528_p5 = por %p1527_p0, %p1526_p9 }
 0x271   : > { %p1529_p10 = pnand %p1528_p5, %p1524_p2 }
 0x274   : > { %1195 = vmatmul.msk.f32.gmra.mxu1 %vm724_vm0, %v1967_v29 }
 0x2e9   : > { %v917_v29 = vpop.f32.mrf.mxu1 }
 0x2ea   : > { %v918_v42 = vadd.f32 %v1300_v24, %v917_v29 }
 0x2ec   : > { %v1196_v45 = vmul.f32 -1.442695, %v918_v42 }
 0x2ee   : > { %1315 = vpow2.f32 %v1196_v45 }
 0x2ef   : > { %1317 = vrcp.f32 %v792_v44 }
 0x2f1   : > { %v920_v48 = vpop.f32.mrf.mxu1 }
 0x2f2   : > { %v921_v49 = vadd.f32 %v1300_v24, %v920_v48 }
 0x2f4   : > { %v1316_v50 = vpop.eup %1315  ;;  %v1197_v52 = vmul.f32 -1.442695, %v921_v49 }
 0x2f5   : > { %v1318_v54 = vpop.eup %1317  ;;  %v929_v55 = vadd.f32 1.0, %v1316_v50 }
 0x2f6   : > { %1319 = vpow2.f32 %v1197_v52  ;;  %v839_v57 = vmul.f32 %v1318_v54, %v792_v44  ;;  %vm844_vm14 = vweird.f32 %v1318_v54 }
 0x2f7   : > { %1321 = vrcp.f32 %v929_v55  ;;  %v942_v7 = vand.u32 2147483648, %v929_v55  ;;  %v940_v9 = vand.u32 2147483647, %v929_v55  ;;  %vm936_vm0 = vweird.f32 %v929_v55  ;;  %vm2015_vm1 = vmor %vm843_vm13, %vm844_vm14 }
 0x2f8   : > { %v840_v62 = vsub.f32 1.0, %v839_v57 }
 0x2f9   : > { %v943_v17 = vor.u32 1.1754944e-38, %v942_v7  ;;  %vm941_vm3 = vcmp.eq.f32.partialorder %v940_v9, 8.507059e+37 }
 0x2fa   : > { %v841_v5 = vmul.f32 %v1318_v54, %v840_v62 }
 0x2fc   : > { %v1320_v59 = vpop.eup %1319  ;;  %v842_v13 = vadd.f32 %v1318_v54, %v841_v5 }
 0x2fd   : > { %v1322_v63 = vpop.eup %1321  ;;  %v930_v1 = vadd.f32 1.0, %v1320_v59 }
 0x2fe   : > { %v932_v2 = vmul.f32 %v1322_v63, %v929_v55  ;;  %vm937_vm15 = vweird.f32 %v1322_v63  ;;  %v846_v26 = vsel %vm2015_vm1, %v1318_v54, %v842_v13 }
 0x2ff   : > { %1323 = vrcp.f32 %v930_v1  ;;  %vm938_vm2 = vmor %vm936_vm0, %vm937_vm15  ;;  %v957_v28 = vand.u32 2147483648, %v930_v1  ;;  %v955_v31 = vand.u32 2147483647, %v930_v1  ;;  %v851_v33 = vsel %vm848_vm4, %v850_v21, %v846_v26 }
 0x300   : > { %v933_v4 = vsub.f32 1.0, %v932_v2  ;;  %vm951_vm6 = vweird.f32 %v930_v1  ;;  %v964_v36 = vsub.f32 1.0, %v851_v33  ;;  %v962_v38 = vmul.f32 %v851_v33, %v1922_v53 }
 0x301   : > { %v958_v43 = vor.u32 1.1754944e-38, %v957_v28  ;;  %vm956_vm8 = vcmp.eq.f32.partialorder %v955_v31, 8.507059e+37 }
 0x302   : > { %v934_v8 = vmul.f32 %v1322_v63, %v933_v4 }
 0x304   : > { %v935_v12 = vadd.f32 %v1322_v63, %v934_v8 }
 0x305   : > { %v1324_v16 = vpop.eup %1323 }
 0x306   : > { %v947_v18 = vmul.f32 %v1324_v16, %v930_v1  ;;  %v939_v19 = vsel %vm938_vm2, %v1322_v63, %v935_v12  ;;  %vm952_vm5 = vweird.f32 %v1324_v16 }
 0x307   : > { %v944_v22 = vsel %vm941_vm3, %v943_v17, %v939_v19  ;;  %vm953_vm7 = vmor %vm951_vm6, %vm952_vm5 }
 0x308   : > { %v948_v25 = vsub.f32 1.0, %v947_v18  ;;  %v965_v27 = vmul.f32 %v963_v20, %v944_v22 }
 0x30a   : > { %v949_v30 = vmul.f32 %v1324_v16, %v948_v25  ;;  %v967_v32 = vadd.f32 %v965_v27, %v961_v23 }
 0x30c   : > { %v950_v34 = vadd.f32 %v1324_v16, %v949_v30  ;;  %969 = vst [vmem:[%s1861_s13] sm:$0xff] %v967_v32 }
 0x30d   : > { %971 = vst [vmem:[#allocation2] sm:$0xff] %v967_v32 }
 0x30e   : > { %v954_v35 = vsel %vm953_vm7, %v1324_v16, %v950_v34 }
 0x30f   : > { %v959_v37 = vsel %vm956_vm8, %v958_v43, %v954_v35 }
 0x310   : > { %v966_v39 = vmul.f32 %v964_v36, %v959_v37 }
 0x312   : > { %v968_v40 = vadd.f32 %v966_v39, %v962_v38 }
 0x314   : > { %970 = vst [vmem:[%s1861_s13 + $0x8] sm:$0xff] %v968_v40 }
 0x315   : > { %972 = vst [vmem:[#allocation2 + $0x8] sm:$0xff] %v968_v40 }
 0x316   : > { %1532 = shalt.err (!%p1529_p10)
}
 0x317   : > { %s1589_s10 = smov 128   ;;  %s1590_s29 = smov 8  }
 0x318   : > { %1226 = dma.vmem_to_hbm [thread:$0]  (%p1688_p11), %s987_s14, 256, %s989_s20, %s974_s2, %s1589_s10, %s1589_s10, %s1590_s29  }
 0x319 PF: > { %s2119_s17 = sld [smem:[#allocation17_spill]]  ;;  %p2121_p7 = scmp.ge.s32.totalorder %s1579_s30, 2 }
 0x31b   : > { %p1249_p4 = pnand %p2121_p7, %p1692_p12 }
 0x31d   : > { %p1250_p1 = pneg %p1249_p4 }
 0x31f   : > { %s1003_s0 = sand.u32 1, %s2119_s17  }
 0x320   : > { %s1004_s25 = scalar_lea.sflag [#allocation5], %s1003_s0 }
 0x321   : > { %1562 = dma.done.wait (%p1250_p1), %s1004_s25, 256  }
 0x322   : > { %1564 = vsyncadd (%p1250_p1), %s1004_s25, 4294967040  ;;  %s2122_s30 = sld [smem:[#allocation19_spill]]  ;;  %s2125_s27 = smov %s1571_s28 }
 0x323   : > { %s2123_s13 = sld [smem:[#allocation18_spill]] }
 0x324   : > { %s2124_s29 = sld [smem:[#allocation20_spill]] }
 0x328   : > { %p20_p13 = scmp.ge.s32.totalorder %s2122_s30, 4  }
 0x329   : > { %s2126_s28 = smov %s2123_s13 }
 0x32a   :  { %22 = sbr.rel (!%p20_p13) target bundleno = 12 (0xc), region = 147 }
 0x32f   :  { %1010 = vsyncpa [#allocation4], 1 }
 0x330   :  { %1012 = vsyncpa [#allocation4 + $0x1], 1 }
 0x331   :  { %1013 = vsyncpa [#allocation7], 1 }
 0x332   :  { %1014 = vsyncpa [#allocation5], 1 }
 0x333   :  { %1016 = vsyncpa [#allocation5 + $0x1], 1 }

</bundles_post_ra>
